<compile_context>
chip_gen: v5e
topology: v5e:2x2
jax: 0.10.0
libtpu: 0.0.40
codegen_flags: <defaults>
</compile_context>

<pallas_src>
import functools
import math

import jax
import jax.numpy as jnp
import numpy as np
from jax.experimental import pallas as pl
from jax.experimental.pallas import tpu as pltpu


def _block_causal_mask(group_tokens, window_size):
  """Compile-time additive mask: 0 where (same window AND causal), else -1e30.

  Because group_tokens is a multiple of window_size (except in the single-tile
  small-sequence case where it equals seq_len), the same (G, G) mask is valid
  for every group of windows and every tile."""
  idx = np.arange(group_tokens)
  row, col = idx[:, None], idx[None, :]
  ok = (col <= row) & ((row // window_size) == (col // window_size))
  return np.where(ok, 0.0, -1e30).astype(np.float32)


def _choose_tiling(seq_len, window_size, embed_dim, batch, *,
                   score_width=256, target_tokens=1024,
                   vmem_budget_bytes=20 * 1024 * 1024):
  """Pick (tile_tokens, group_tokens, num_tiles).

  group_tokens = width of one dense block-diagonal score tile; aim for 256 to
  fill the v6e/v7x 2x256^2 MXU (pass score_width=128 on v5e).  Must be a
  multiple of both window_size and 8 (sublane constraint on the x BlockSpec).
  tile_tokens  = tokens per grid step (a multiple of group_tokens), bounded by
  an honest VMEM estimate and by keeping >= 2 parallel grid steps."""
  W = window_size
  m = 8 // math.gcd(W, 8)              # group_windows must be a multiple of m
  gw = max(m, ((score_width // W) // m) * m)
  # If even one full-width group blows the budget (very large E), shrink the
  # score-tile width in whole multiples of m windows.
  while gw > m:
    gt = gw * W
    if gt * (46 * embed_dim + 10 * gt) <= vmem_budget_bytes:
      break
    gw = max(m, ((gw // 2) // m) * m)
  group_tokens = gw * W

  if seq_len <= group_tokens:
    # One block spanning the full (small) sequence dim — always a legal block.
    return seq_len, seq_len, 1

  # Honest per-token VMEM bytes for a tile of T tokens:
  #   pipelined x in/out (f32, double-buffered)        : 16*E
  #   qkv f32 (12E) + q/k/v bf16 (6E) + x bf16 (2E)    : 20*E
  #   attn f32 (4E) + attn bf16 (2E) + y f32 (4E)      : 10*E
  #   scores/exp/probs (f32 + f32 + bf16, width G)     : 10*G
  per_token = 46 * embed_dim + 10 * group_tokens
  max_groups = max(1, (vmem_budget_bytes // per_token) // group_tokens)
  want_groups = max(1, target_tokens // group_tokens)
  avail_groups = max(1, seq_len // group_tokens)
  ngroups = min(max_groups, want_groups, avail_groups)
  tile_tokens = ngroups * group_tokens
  num_tiles = pl.cdiv(seq_len, tile_tokens)
  # v7x has two TensorCores: keep at least 2 parallel grid steps if possible.
  if batch * num_tiles < 2 and ngroups > 1:
    ngroups = max(1, ngroups // 2)
    tile_tokens = ngroups * group_tokens
    num_tiles = pl.cdiv(seq_len, tile_tokens)
  return tile_tokens, group_tokens, num_tiles


def _local_attn_kernel(x_ref, wqkv_ref, bqkv_ref, wo_ref, bo_ref, mask_ref,
                       o_ref, *, embed_dim, group_tokens, tile_tokens,
                       seq_len, mask_tail):
  """One (batch, token-tile) step: fused QKV projection, grouped block-diagonal
  windowed attention, output projection and residual."""
  E, G, T = embed_dim, group_tokens, tile_tokens
  ng = T // G

  x = x_ref[0]                                             # (T, E) f32
  if mask_tail:
    # Ragged final tile: zero rows past seq_len so edge-block garbage can never
    # inject NaN/Inf into valid rows (softmax is row-local; out-of-range keys
    # are already excluded by the causal/block-diag mask; out-of-range output
    # rows are dropped by the masked edge store).
    pos = (pl.program_id(1) * T
           + jax.lax.broadcasted_iota(jnp.int32, (T, 1), 0))
    x = jnp.where(pos < seq_len, x, 0.0)
  xb = x.astype(jnp.bfloat16)

  # Fused Q/K/V projection (softmax scale pre-folded into wq/bq); one
  # (T, E) @ (E, 3E) MXU matmul with f32 accumulation.
  qkv = jnp.dot(xb, wqkv_ref[...],
                preferred_element_type=jnp.float32) + bqkv_ref[...]
  q = qkv[:, 0 * E:1 * E].reshape(ng, G, E).astype(jnp.bfloat16)
  k = qkv[:, 1 * E:2 * E].reshape(ng, G, E).astype(jnp.bfloat16)
  v = qkv[:, 2 * E:3 * E].reshape(ng, G, E).astype(jnp.bfloat16)

  # Dense lane-wide (G, G) score tiles per group of windows; window locality
  # and causality via the compile-time additive mask (broadcast over groups).
  s = jnp.einsum("gqd,gkd->gqk", q, k, preferred_element_type=jnp.float32)
  s = s + mask_ref[...]

  s_max = jnp.max(s, axis=-1, keepdims=True)
  e = jnp.exp(s - s_max)
  denom = jnp.sum(e, axis=-1, keepdims=True)
  p = e * pl.reciprocal(denom, approx=True)                # EUP slot

  attn = jnp.einsum("gqk,gkd->gqd", p.astype(jnp.bfloat16), v,
                    preferred_element_type=jnp.float32)    # (ng, G, E)
  attn = attn.reshape(T, E).astype(jnp.bfloat16)

  y = jnp.dot(attn, wo_ref[...],
              preferred_element_type=jnp.float32) + bo_ref[...]
  o_ref[0] = (y + x).astype(o_ref.dtype)                   # residual (f32)


def fuse_params(params, *, num_heads):
  """One-time parameter fusion (call at init, NOT per forward): fold the
  softmax scale into wq/bq and fuse Q/K/V into a single (E, 3E) bf16 operand
  so the forward path never rebuilds / rewrites weights to HBM."""
  E = params["wq"].shape[0]
  scale = float(E // num_heads) ** (-0.5)
  wqkv = jnp.concatenate(
      [params["wq"] * scale, params["wk"], params["wv"]],
      axis=1).astype(jnp.bfloat16)                          # (E, 3E)
  bqkv = jnp.concatenate(
      [params["bq"] * scale, params["bk"], params["bv"]],
      axis=1).astype(jnp.float32)                           # (1, 3E)
  return {"wqkv": wqkv, "bqkv": bqkv,
          "wo": params["wo"].astype(jnp.bfloat16),
          "bo": params["bo"].astype(jnp.float32)}


def local_self_attention(x, fused, *, window_size, score_width=256,
                         target_tokens=1024):
  """Pallas implementation of LocalSelfAttention.forward.

  x: (B, S, E) float32.  fused: dict from fuse_params()."""
  B, S, E = x.shape
  T, G, num_tiles = _choose_tiling(S, window_size, E, B,
                                   score_width=score_width,
                                   target_tokens=target_tokens)
  mask_tail = (S % T) != 0
  mask = jnp.asarray(_block_causal_mask(G, window_size))

  kernel = functools.partial(
      _local_attn_kernel, embed_dim=E, group_tokens=G, tile_tokens=T,
      seq_len=S, mask_tail=mask_tail)

  xspec = pl.BlockSpec((1, T, E), lambda b, t: (b, t, 0))
  const = lambda b, t: (0, 0)
  # TODO(synk): pipeline_mode=pl.Buffered(1) on the weight/mask specs would
  # halve their (once-fetched) VMEM footprint at large E; left at the default.

  # Advisory cost hint for XLA scheduling around the custom call.
  flops = int(B * num_tiles * (8 * T * E * E + 4 * T * G * E))
  transcendentals = int(B * num_tiles * T * G)
  bytes_accessed = int(2 * B * S * E * 4 + 8 * E * E + 4 * G * G)

  # Honest VMEM estimate (tile intermediates + double-buffered weights/mask);
  # limit kept well under v7x's 64 MiB physical VMEM.
  vmem_estimate = T * (46 * E + 10 * G) + 16 * E * E + 8 * G * G
  vmem_limit = int(min(44 * 1024 * 1024,
                       max(32 * 1024 * 1024, 2 * vmem_estimate)))

  return pl.pallas_call(
      kernel,
      out_shape=jax.ShapeDtypeStruct((B, S, E), x.dtype),
      grid=(B, num_tiles),
      in_specs=[xspec,
                pl.BlockSpec((E, 3 * E), const),     # fused wqkv (bf16)
                pl.BlockSpec((1, 3 * E), const),     # fused bqkv (f32)
                pl.BlockSpec((E, E), const),         # wo (bf16)
                pl.BlockSpec((1, E), const),         # bo (f32)
                pl.BlockSpec((G, G), const)],        # block-diag+causal mask
      out_specs=xspec,
      compiler_params=pltpu.CompilerParams(
          dimension_semantics=("parallel", "parallel"),
          vmem_limit_bytes=vmem_limit),
      cost_estimate=pl.CostEstimate(flops=flops,
                                    transcendentals=transcendentals,
                                    bytes_accessed=bytes_accessed),
  )(x, fused["wqkv"], fused["bqkv"], fused["wo"], fused["bo"], mask)


def _reference(x, params, *, num_heads, window_size):
  """Pure-JAX f32 reference mirroring the PyTorch forward, for validation."""
  B, S, E = x.shape
  scale = float(E // num_heads) ** (-0.5)
  q = x @ params["wq"] + params["bq"][0]
  k = x @ params["wk"] + params["bk"][0]
  v = x @ params["wv"] + params["bv"][0]
  outs = []
  num_windows = -(-S // window_size)
  for i in range(num_windows):
    s0, s1 = i * window_size, min((i + 1) * window_size, S)
    qw, kw, vw = q[:, s0:s1], k[:, s0:s1], v[:, s0:s1]
    aw = jnp.einsum("bqd,bkd->bqk", qw, kw) * scale
    tri = jnp.tril(jnp.ones((s1 - s0, s1 - s0)))
    aw = jnp.where(tri == 0, -jnp.inf, aw)
    aw = jax.nn.softmax(aw, axis=-1)
    outs.append(jnp.einsum("bqk,bkd->bqd", aw, vw))
  o = jnp.concatenate(outs, axis=1)
  return o @ params["wo"] + params["bo"][0] + x


def init_params(key, embed_dim):
  keys = jax.random.split(key, 8)
  scale = 1.0 / (embed_dim ** 0.5)
  def w(k):
    return jax.random.normal(k, (embed_dim, embed_dim), jnp.float32) * scale
  def b(k):
    return jax.random.normal(k, (1, embed_dim), jnp.float32) * 0.01
  return {
      "wq": w(keys[0]), "bq": b(keys[1]),
      "wk": w(keys[2]), "bk": b(keys[3]),
      "wv": w(keys[4]), "bv": b(keys[5]),
      "wo": w(keys[6]), "bo": b(keys[7]),
  }


if __name__ == "__main__":
  num_heads, window_size = 4, 8
  key = jax.random.PRNGKey(0)

  # Case 1: small sequence with a ragged last window (single full-seq tile).
  # Case 2: multi-tile path (two 256-token groups per tile, ragged tail tile)
  #         exercising edge-block handling without any host-side padding.
  for (batch, seq_len, embed_dim) in [(2, 20, 128), (1, 520, 128)]:
    kx, kp, key = jax.random.split(key, 3)
    x = jax.random.normal(kx, (batch, seq_len, embed_dim), jnp.float32)
    params = init_params(kp, embed_dim)
    fused = fuse_params(params, num_heads=num_heads)

    out = jax.block_until_ready(
        local_self_attention(x, fused, window_size=window_size))
    ref = _reference(x, params, num_heads=num_heads, window_size=window_size)

    assert out.shape == (batch, seq_len, embed_dim)
    # bf16 matmul operands (f32 accumulation) + approx reciprocal => looser
    # tolerance than a pure-f32 comparison; still catches structural errors.
    assert jnp.allclose(out, ref, atol=5e-2, rtol=5e-2), \
        f"mismatch vs reference at shape {(batch, seq_len, embed_dim)}"

  print("KERNEL_OK")
</pallas_src>

<mosaic_0001>
module attributes {stable_mosaic.version = 11 : i64} {
  func.func @_local_attn_kernel(%arg0: i32, %arg1: i32, %arg2: memref<1x20x128xf32, #tpu.memory_space<vmem>>, %arg3: memref<128x384xbf16, #tpu.memory_space<vmem>>, %arg4: memref<1x384xf32, #tpu.memory_space<vmem>>, %arg5: memref<128x128xbf16, #tpu.memory_space<vmem>>, %arg6: memref<1x128xf32, #tpu.memory_space<vmem>>, %arg7: memref<20x20xf32, #tpu.memory_space<vmem>>, %arg8: memref<1x20x128xf32, #tpu.memory_space<vmem>>) attributes {dimension_semantics = [#tpu.dimension_semantics<parallel>, #tpu.dimension_semantics<parallel>], iteration_bounds = array<i64: 2, 1>, scalar_prefetch = 0 : i64, scratch_operands = 0 : i64, tpu.core_type = #tpu.core_type<tc>, window_params = [{transform_indices = @transform_0, window_bounds = array<i64: 1, 20, 128>}, {pipeline_mode = #tpu.pipeline_mode<synchronous>, transform_indices = @transform_1, window_bounds = array<i64: 128, 384>}, {pipeline_mode = #tpu.pipeline_mode<synchronous>, transform_indices = @transform_2, window_bounds = array<i64: 1, 384>}, {pipeline_mode = #tpu.pipeline_mode<synchronous>, transform_indices = @transform_3, window_bounds = array<i64: 128, 128>}, {pipeline_mode = #tpu.pipeline_mode<synchronous>, transform_indices = @transform_4, window_bounds = array<i64: 1, 128>}, {pipeline_mode = #tpu.pipeline_mode<synchronous>, transform_indices = @transform_5, window_bounds = array<i64: 20, 20>}, {transform_indices = @transform_6, window_bounds = array<i64: 1, 20, 128>}]} {
    %c0 = arith.constant 0 : index
    %c0_0 = arith.constant 0 : index
    %c0_1 = arith.constant 0 : index
    %0 = vector.load %arg2[%c0, %c0_0, %c0_1] : memref<1x20x128xf32, #tpu.memory_space<vmem>>, vector<1x20x128xf32>
    %1 = vector.shape_cast %0 : vector<1x20x128xf32> to vector<20x128xf32>
    %2 = arith.truncf %1 : vector<20x128xf32> to vector<20x128xbf16>
    %c0_2 = arith.constant 0 : index
    %c0_3 = arith.constant 0 : index
    %3 = vector.load %arg3[%c0_2, %c0_3] : memref<128x384xbf16, #tpu.memory_space<vmem>>, vector<128x384xbf16>
    %cst = arith.constant dense<0.000000e+00> : vector<20x384xf32>
    %4 = tpu.matmul %2, %3, %cst {dimension_numbers = #tpu.dot_dimension_numbers<[1], [0], [0], [1], [0, 0, 1, 1], [], []>} : vector<20x128xbf16>, vector<128x384xbf16>, vector<20x384xf32> -> vector<20x384xf32>
    %c0_4 = arith.constant 0 : index
    %c0_5 = arith.constant 0 : index
    %5 = vector.load %arg4[%c0_4, %c0_5] : memref<1x384xf32, #tpu.memory_space<vmem>>, vector<1x384xf32>
    %6 = vector.broadcast %5 : vector<1x384xf32> to vector<20x384xf32>
    %7 = arith.addf %4, %6 : vector<20x384xf32>
    %8 = vector.extract_strided_slice %7 {offsets = [0, 0], sizes = [20, 128], strides = [1, 1]} : vector<20x384xf32> to vector<20x128xf32>
    %9 = vector.shape_cast %8 : vector<20x128xf32> to vector<1x20x128xf32>
    %10 = arith.truncf %9 : vector<1x20x128xf32> to vector<1x20x128xbf16>
    %11 = vector.extract_strided_slice %7 {offsets = [0, 128], sizes = [20, 128], strides = [1, 1]} : vector<20x384xf32> to vector<20x128xf32>
    %12 = vector.shape_cast %11 : vector<20x128xf32> to vector<1x20x128xf32>
    %13 = arith.truncf %12 : vector<1x20x128xf32> to vector<1x20x128xbf16>
    %14 = vector.extract_strided_slice %7 {offsets = [0, 256], sizes = [20, 128], strides = [1, 1]} : vector<20x384xf32> to vector<20x128xf32>
    %15 = vector.shape_cast %14 : vector<20x128xf32> to vector<1x20x128xf32>
    %16 = arith.truncf %15 : vector<1x20x128xf32> to vector<1x20x128xbf16>
    "tpu.trace_start"() <{level = 10 : i32, message = "gqd,gkd->gqk"}> : () -> ()
    %cst_6 = arith.constant dense<0.000000e+00> : vector<1x20x20xf32>
    %17 = tpu.matmul %10, %13, %cst_6 {dimension_numbers = #tpu.dot_dimension_numbers<[2], [2], [1], [1], [0, 0, 0, 1, 1, 1], [0], [0]>} : vector<1x20x128xbf16>, vector<1x20x128xbf16>, vector<1x20x20xf32> -> vector<1x20x20xf32>
    "tpu.trace_stop"() : () -> ()
    %c0_7 = arith.constant 0 : index
    %c0_8 = arith.constant 0 : index
    %18 = vector.load %arg7[%c0_7, %c0_8] : memref<20x20xf32, #tpu.memory_space<vmem>>, vector<20x20xf32>
    %19 = vector.shape_cast %18 : vector<20x20xf32> to vector<1x20x20xf32>
    %20 = arith.addf %17, %19 : vector<1x20x20xf32>
    %cst_9 = arith.constant dense<0xFF800000> : vector<1x20xf32>
    %21 = vector.multi_reduction <maximumf>, %20, %cst_9 [2] : vector<1x20x20xf32> to vector<1x20xf32>
    %22 = vector.shape_cast %21 : vector<1x20xf32> to vector<1x20x1xf32>
    %23 = vector.broadcast %22 : vector<1x20x1xf32> to vector<1x20x20xf32>
    %24 = arith.subf %20, %23 : vector<1x20x20xf32>
    %25 = math.exp %24 : vector<1x20x20xf32>
    %cst_10 = arith.constant dense<0.000000e+00> : vector<1x20xf32>
    %26 = vector.multi_reduction <add>, %25, %cst_10 [2] : vector<1x20x20xf32> to vector<1x20xf32>
    %27 = vector.shape_cast %26 : vector<1x20xf32> to vector<1x20x1xf32>
    %28 = tpu.reciprocal %27 {approx = true} : vector<1x20x1xf32> -> vector<1x20x1xf32>
    %29 = vector.broadcast %28 : vector<1x20x1xf32> to vector<1x20x20xf32>
    %30 = arith.mulf %25, %29 : vector<1x20x20xf32>
    %31 = arith.truncf %30 : vector<1x20x20xf32> to vector<1x20x20xbf16>
    "tpu.trace_start"() <{level = 10 : i32, message = "gqk,gkd->gqd"}> : () -> ()
    %cst_11 = arith.constant dense<0.000000e+00> : vector<1x20x128xf32>
    %32 = tpu.matmul %31, %16, %cst_11 {dimension_numbers = #tpu.dot_dimension_numbers<[2], [1], [1], [2], [0, 0, 0, 1, 1, 2], [0], [0]>} : vector<1x20x20xbf16>, vector<1x20x128xbf16>, vector<1x20x128xf32> -> vector<1x20x128xf32>
    "tpu.trace_stop"() : () -> ()
    %33 = vector.shape_cast %32 : vector<1x20x128xf32> to vector<20x128xf32>
    %34 = arith.truncf %33 : vector<20x128xf32> to vector<20x128xbf16>
    %c0_12 = arith.constant 0 : index
    %c0_13 = arith.constant 0 : index
    %35 = vector.load %arg5[%c0_12, %c0_13] : memref<128x128xbf16, #tpu.memory_space<vmem>>, vector<128x128xbf16>
    %cst_14 = arith.constant dense<0.000000e+00> : vector<20x128xf32>
    %36 = tpu.matmul %34, %35, %cst_14 {dimension_numbers = #tpu.dot_dimension_numbers<[1], [0], [0], [1], [0, 0, 1, 1], [], []>} : vector<20x128xbf16>, vector<128x128xbf16>, vector<20x128xf32> -> vector<20x128xf32>
    %c0_15 = arith.constant 0 : index
    %c0_16 = arith.constant 0 : index
    %37 = vector.load %arg6[%c0_15, %c0_16] : memref<1x128xf32, #tpu.memory_space<vmem>>, vector<1x128xf32>
    %38 = vector.broadcast %37 : vector<1x128xf32> to vector<20x128xf32>
    %39 = arith.addf %36, %38 : vector<20x128xf32>
    %40 = arith.addf %39, %1 : vector<20x128xf32>
    %c0_17 = arith.constant 0 : index
    %c0_18 = arith.constant 0 : index
    %c0_19 = arith.constant 0 : index
    %41 = vector.load %arg8[%c0_17, %c0_18, %c0_19] : memref<1x20x128xf32, #tpu.memory_space<vmem>>, vector<1x20x128xf32>
    %42 = vector.shape_cast %41 : vector<1x20x128xf32> to vector<20x128xf32>
    %43 = vector.shape_cast %40 : vector<20x128xf32> to vector<1x20x128xf32>
    tpu.vector_store %arg8[%c0_17, %c0_18, %c0_19], %43 {strides = array<i32>} : memref<1x20x128xf32, #tpu.memory_space<vmem>>, vector<1x20x128xf32>,
    return
  }
  func.func @transform_0(%arg0: i32, %arg1: i32) -> (i32, i32, i32) {
    %c0_i32 = arith.constant 0 : i32
    %c0_i32_0 = arith.constant 0 : i32
    return %arg0, %arg1, %c0_i32 : i32, i32, i32
  }
  func.func @transform_1(%arg0: i32, %arg1: i32) -> (i32, i32) {
    %c0_i32 = arith.constant 0 : i32
    %c0_i32_0 = arith.constant 0 : i32
    %c0_i32_1 = arith.constant 0 : i32
    return %c0_i32, %c0_i32_0 : i32, i32
  }
  func.func @transform_2(%arg0: i32, %arg1: i32) -> (i32, i32) {
    %c0_i32 = arith.constant 0 : i32
    %c0_i32_0 = arith.constant 0 : i32
    %c0_i32_1 = arith.constant 0 : i32
    return %c0_i32, %c0_i32_0 : i32, i32
  }
  func.func @transform_3(%arg0: i32, %arg1: i32) -> (i32, i32) {
    %c0_i32 = arith.constant 0 : i32
    %c0_i32_0 = arith.constant 0 : i32
    %c0_i32_1 = arith.constant 0 : i32
    return %c0_i32, %c0_i32_0 : i32, i32
  }
  func.func @transform_4(%arg0: i32, %arg1: i32) -> (i32, i32) {
    %c0_i32 = arith.constant 0 : i32
    %c0_i32_0 = arith.constant 0 : i32
    %c0_i32_1 = arith.constant 0 : i32
    return %c0_i32, %c0_i32_0 : i32, i32
  }
  func.func @transform_5(%arg0: i32, %arg1: i32) -> (i32, i32) {
    %c0_i32 = arith.constant 0 : i32
    %c0_i32_0 = arith.constant 0 : i32
    %c0_i32_1 = arith.constant 0 : i32
    return %c0_i32, %c0_i32_0 : i32, i32
  }
  func.func @transform_6(%arg0: i32, %arg1: i32) -> (i32, i32, i32) {
    %c0_i32 = arith.constant 0 : i32
    %c0_i32_0 = arith.constant 0 : i32
    return %arg0, %arg1, %c0_i32 : i32, i32, i32
  }
}

</mosaic_0001>

<bundles_post_ra>
// kernel: tpu_custom_call.1
= control target key start
LH: loop header
LB: loop body
LE: loop exit
PB: predicated region body
PF: predicated region fallthrough
CT: control target
= control target key end

     0   :  { %11 = vsyncpa [#allocation3], 0  ;;  %s1407_s0 = inlined_call_operand.vmem [shape: f32[2,20,128], index: 0, kind: input, shape index: {}]   ;;  %s1408_s1 = inlined_call_operand.hbm [shape: bf16[128,384], index: 1, kind: input, shape index: {}]   ;;  %s1409_s2 = inlined_call_operand.hbm [shape: f32[1,384], index: 2, kind: input, shape index: {}]   ;;  %s1410_s3 = inlined_call_operand.vmem [shape: bf16[128,128], index: 3, kind: input, shape index: {}]   ;;  %s1411_s4 = inlined_call_operand.vmem [shape: f32[1,128], index: 4, kind: input, shape index: {}]   ;;  %s1412_s5 = inlined_call_operand.vmem [shape: f32[20,20], index: 5, kind: input, shape index: {}]   ;;  %s1413_s6 = inlined_call_operand.vmem [shape: f32[2,20,128], index: 6, kind: output, shape index: {}]  }
   0x1   :  { %12 = vsyncpa [#allocation5], 0  ;;  %s1262_s21 = smov 0   ;;  %s1264_s22 = smov 0  }
   0x2   :  { %s1266_s23 = smov 0  }
   0x3 LB: > { %s887_s24 = sadd.s32 4294967295, %s1221_s23   ;;  %s30_s25 = sadd.s32 1, %s1217_s22  ;;  %s1221_s23 = sphi %s1266_s23, %s18_s23   ;;  %s1217_s22 = sphi %s1264_s22, %s1417_s22   ;;  %s1213_s21 = sphi %s1262_s21, %s1416_s21  }
   0x4   : > { %p32_p0 = scmp.ge.s32.totalorder %s30_s25, 2  ;;  %p889_p1 = scmp.ge.s32.totalorder %s1221_s23, 1 }
   0x5   : > { %p196_p2 = scmp.lt.s32.totalorder %s1221_s23, 3  ;;  %p1287_p4 = scmp.eq.s32.totalorder %s887_s24, 0 }
   0x6   : > { %s1419_s25 = smov (%p32_p0, %s30_s25), 0  ;;  %s207_s30 = sshll.u32 %s1408_s1, 4  ;;  %s208_s30 = int_to_ptr.hbm [resolvable:$true] %s207_s30 }
   0x7   : > { %p1283_p3 = pnand %p889_p1, %p196_p2  ;;  %s1223_s7 = smov [#allocation2]  }
   0x8   : > { %s209_s8 = sshll.u32 %s1223_s7, 4  ;;  %s222_s11 = sshll.u32 %s1409_s2, 4  ;;  %s210_s8 = int_to_ptr.vmem [resolvable:$true] %s209_s8  ;;  %s223_s11 = int_to_ptr.hbm [resolvable:$true] %s222_s11 }
   0x9   : > { %p1079_p5 = pneg %p1283_p3  ;;  %s1224_s12 = smov 192  }
   0xa   : > { %s1225_s13 = smov 12   ;;  %s1226_s14 = smov [#allocation4]  }
   0xb   : > { %p1080_p6 = pnand %p1287_p4, %p1079_p5  ;;  %s224_s15 = sshll.u32 %s1226_s14, 4  ;;  %s225_s15 = int_to_ptr.vmem [resolvable:$true] %s224_s15 }
   0xc   : > { %259 = sbr.rel (%p1283_p3) target bundleno = 905 (0x389), region = 44 }
   0xd   : > { %1082 = dma.hbm_to_vmem [thread:$0]  (!%p1080_p6), %s208_s30, 3072, %s210_s8, [#allocation3], %s1224_s12, %s1224_s12, %s1225_s13  }
   0xe   : > { %1085 = dma.hbm_to_vmem [thread:$0]  (!%p1080_p6), %s223_s11, 48, %s225_s15, [#allocation5]  }
  0x11   : > { %1204 = dma.done.wait (%p1287_p4), [#allocation3], 3072  }
  0x12   : > { %1206 = vsyncadd (%p1287_p4), [#allocation3], 4294964224 }
  0x13   : > { %1208 = dma.done.wait (%p1287_p4), [#allocation5], 48  }
  0x14   : > { %1210 = vsyncadd (%p1287_p4), [#allocation5], 4294967248  ;;  %v1051_v0 = vld [vmem:[#allocation2 + $0xac] sm:$0xf]  ;;  %v986_v1 = vld [vmem:[#allocation2 + $0xb4] sm:$0xf0] }
  0x15   : > { %v1048_v2 = vld [vmem:[#allocation2 + $0x94] sm:$0xf]  ;;  %v989_v3 = vor.u32 %v1051_v0, %v986_v1  ;;  %v974_v4 = vld [vmem:[#allocation2 + $0x9c] sm:$0xf0]  ;;  %v984_v5 = vld [vmem:[#allocation2 + $0xa8] sm:$0xf] }
  0x16   : > { %v977_v6 = vor.u32 %v1048_v2, %v974_v4  ;;  %v1045_v7 = vld [vmem:[#allocation2 + $0x7c] sm:$0xf]  ;;  %v1052_v8 = vld [vmem:[#allocation2 + $0xb0] sm:$0xf0]  ;;  %v962_v9 = vld [vmem:[#allocation2 + $0x84] sm:$0xf0] }
  0x17   : > { %515 = vmatpush.bf16.msra.mxu1 %v989_v3  ;;  %v985_v10 = vor.u32 %v1052_v8, %v984_v5  ;;  %v972_v11 = vld [vmem:[#allocation2 + $0x90] sm:$0xf]  ;;  %v1049_v12 = vld [vmem:[#allocation2 + $0x98] sm:$0xf0]  ;;  %v965_v14 = vor.u32 %v1045_v7, %v962_v9  ;;  %v960_v15 = vld [vmem:[#allocation2 + $0x78] sm:$0xf] }
  0x18   : > { %v973_v13 = vor.u32 %v1049_v12, %v972_v11  ;;  %v1046_v16 = vld [vmem:[#allocation2 + $0x80] sm:$0xf0]  ;;  %v950_v18 = vld [vmem:[#allocation2 + $0x6c] sm:$0xf0]  ;;  %p304_p7 = scmp.lt.s32.totalorder %s1213_s21, 1  ;;  %vm601_vm0 = vcmask 162816  }
  0x19   : > { %497 = vmatpush.bf16.msra.mxu0 %v985_v10  ;;  %v1042_v17 = vld [vmem:[#allocation2 + $0x64] sm:$0xf]  ;;  %v961_v19 = vor.u32 %v1046_v16, %v960_v15  ;;  %v948_v21 = vld [vmem:[#allocation2 + $0x60] sm:$0xf]  ;;  %v1043_v22 = vld [vmem:[#allocation2 + $0x68] sm:$0xf0] }
  0x1a   : > { %v953_v20 = vor.u32 %v1042_v17, %v950_v18  ;;  %v1039_v23 = vld [vmem:[#allocation2 + $0x4c] sm:$0xf]  ;;  %v938_v24 = vld [vmem:[#allocation2 + $0x54] sm:$0xf0]  ;;  %v949_v25 = vor.u32 %v1043_v22, %v948_v21  ;;  %v936_v27 = vld [vmem:[#allocation2 + $0x48] sm:$0xf] }
  0x1b   : > { %516 = vmatpush.bf16.msra.mxu1 %v977_v6  ;;  %v941_v26 = vor.u32 %v1039_v23, %v938_v24  ;;  %v1040_v28 = vld [vmem:[#allocation2 + $0x50] sm:$0xf0]  ;;  %s1421_s21 = smov (!%p304_p7, %s1213_s21), 1  ;;  %v926_v30 = vld [vmem:[#allocation2 + $0x3c] sm:$0xf0]  ;;  %vm608_vm1 = vcmask 158720  }
  0x1c   : > { %v1036_v29 = vld [vmem:[#allocation2 + $0x34] sm:$0xf]  ;;  %v937_v31 = vor.u32 %v1040_v28, %v936_v27  ;;  %s1070_s16 = smul.u32 24, %s1421_s21  ;;  %v924_v33 = vld [vmem:[#allocation2 + $0x30] sm:$0xf]  ;;  %vm662_vm2 = vcmask 1041408  }
  0x1d   : > { %498 = vmatpush.bf16.msra.mxu0 %v973_v13  ;;  %v929_v32 = vor.u32 %v1036_v29, %v926_v30  ;;  %v1037_v34 = vld [vmem:[#allocation2 + $0x38] sm:$0xf0]  ;;  %v914_v36 = vld [vmem:[#allocation2 + $0x24] sm:$0xf0]  ;;  %v912_v39 = vld [vmem:[#allocation2 + $0x18] sm:$0xf] }
  0x1e   : > { %v1033_v35 = vld [vmem:[#allocation2 + $0x1c] sm:$0xf]  ;;  %v925_v37 = vor.u32 %v1037_v34, %v924_v33  ;;  %s311_s19 = scalar_lea.vmem %s1407_s0, %s1070_s16  ;;  %v1034_v40 = vld [vmem:[#allocation2 + $0x20] sm:$0xf0]  ;;  %v902_v42 = vld [vmem:[#allocation2 + $0xc] sm:$0xf0]  ;;  %s321_s7 = scalar_lea.vmem %s1413_s6, %s1070_s16 }
  0x1f   : > { %517 = vmatpush.bf16.msra.mxu1 %v965_v14  ;;  %v917_v38 = vor.u32 %v1033_v35, %v914_v36  ;;  %v1030_v41 = vld [vmem:[#allocation2 + $0x4] sm:$0xf]  ;;  %v913_v44 = vor.u32 %v1034_v40, %v912_v39  ;;  %v1323_v46 = vld [vmem:[%s311_s19 + $0x8] sm:$0xff]  ;;  %v900_v47 = vld [vmem:[#allocation2] sm:$0xf] }
  0x20   : > { %v1321_v43 = vld [vmem:[%s311_s19] sm:$0xff]  ;;  %v905_v45 = vor.u32 %v1030_v41, %v902_v42  ;;  %v1031_v48 = vld [vmem:[#allocation2 + $0x8] sm:$0xf0]  ;;  %v1331_v51 = vld [vmem:[%s311_s19 + $0x10] sm:$0xf] }
  0x21   : > { %499 = vmatpush.bf16.msra.mxu0 %v961_v19  ;;  %v1327_v49 = vpack.c.bf16 %v1323_v46, %v1321_v43  ;;  %v901_v50 = vor.u32 %v1031_v48, %v900_v47  ;;  %v1335_v52 = vpack.c.bf16 %v1331_v51, %v1331_v51  ;;  %v1339_v57 = vld [vmem:[#allocation4] sm:$0x7]  ;;  %v992_v22 = vld [vmem:[#allocation2 + $0xb0] sm:$0xf]  ;;  %v1053_v23 = vld [vmem:[#allocation2 + $0xb8] sm:$0xf0] }
  0x22   : > { %v364_v58 = vperm.slane %v1339_v57, 1  ;;  %v363_v2 = vperm.slane %v1339_v57, 0  ;;  %v980_v24 = vld [vmem:[#allocation2 + $0x98] sm:$0xf]  ;;  %v968_v28 = vld [vmem:[#allocation2 + $0x80] sm:$0xf] }
  0x23   : > { %518 = vmatpush.bf16.msra.mxu1 %v953_v20  ;;  %v1047_v29 = vld [vmem:[#allocation2 + $0x88] sm:$0xf0]  ;;  %v560_v30 = vld [vmem:[%s1412_s5] sm:$0xff]  ;;  %v956_v33 = vld [vmem:[#allocation2 + $0x68] sm:$0xf] }
  0x24   : > { %v1044_v34 = vld [vmem:[#allocation2 + $0x70] sm:$0xf0]  ;;  %v1041_v39 = vld [vmem:[#allocation2 + $0x58] sm:$0xf0]  ;;  %v561_v40 = vld [vmem:[%s1412_s5 + $0x8] sm:$0xff] }
  0x25   : > { %500 = vmatpush.bf16.msra.mxu0 %v949_v25  ;;  %v993_v25 = vor.u32 %v1053_v23, %v992_v22 }
  0x27   : > { %519 = vmatpush.bf16.msra.mxu1 %v941_v26  ;;  %v1050_v26 = vld [vmem:[#allocation2 + $0xa0] sm:$0xf0]  ;;  %533 = vmatpush.bf16.msra.mxu2 %v993_v25 }
  0x28   : > { %v981_v27 = vor.u32 %v1050_v26, %v980_v24 }
  0x29   : > { %501 = vmatpush.bf16.msra.mxu0 %v937_v31  ;;  %v969_v31 = vor.u32 %v1047_v29, %v968_v28 }
  0x2b   : > { %520 = vmatpush.bf16.msra.mxu1 %v929_v32  ;;  %534 = vmatpush.bf16.msra.mxu2 %v981_v27 }
  0x2d   : > { %502 = vmatpush.bf16.msra.mxu0 %v925_v37  ;;  %v957_v37 = vor.u32 %v1044_v34, %v956_v33  ;;  %v1060_v34 = vld [vmem:[%s1410_s3 + $0x30] sm:$0xff] }
  0x2f   : > { %521 = vmatpush.bf16.msra.mxu1 %v917_v38  ;;  %535 = vmatpush.bf16.msra.mxu2 %v969_v31  ;;  %v944_v38 = vld [vmem:[#allocation2 + $0x50] sm:$0xf] }
  0x30   : > { %v945_v41 = vor.u32 %v1041_v39, %v944_v38 }
  0x31   : > { %503 = vmatpush.bf16.msra.mxu0 %v913_v44  ;;  %v932_v44 = vld [vmem:[#allocation2 + $0x38] sm:$0xf] }
  0x33   : > { %522 = vmatpush.bf16.msra.mxu1 %v905_v45  ;;  %536 = vmatpush.bf16.msra.mxu2 %v957_v37  ;;  %v1038_v45 = vld [vmem:[#allocation2 + $0x40] sm:$0xf0] }
  0x35   : > { %504 = vmatpush.bf16.msra.mxu0 %v901_v50  ;;  %v933_v50 = vor.u32 %v1038_v45, %v932_v44 }
  0x36   : > { %523 = vmatmul.bf16.vlgmr.msra.gmra.mxu1 %v1327_v49 }
  0x37   : > { %537 = vmatpush.bf16.msra.mxu2 %v945_v41 }
  0x38   : > { %505 = vmatmul.bf16.vlgmr.msra.gmra.mxu0 %v1327_v49 }
  0x3b   : > { %538 = vmatpush.bf16.msra.mxu2 %v933_v50 }
  0x46   : > { %528 = vmatmul.bf16.gmra.mxu1 %v1335_v52 }
  0x48   : > { %510 = vmatmul.bf16.gmra.mxu0 %v1335_v52 }
  0xb3   : > { %v524_v53 = vpop.f32.mrf.mxu1 }
  0xb4   : > { %v525_v0 = vadd.f32 %v524_v53, %v364_v58  ;;  %v920_v53 = vld [vmem:[#allocation2 + $0x20] sm:$0xf] }
  0xb5   : > { %v506_v54 = vpop.f32.mrf.mxu0 }
  0xb6   : > { %v554_v6 = vpack.c.bf16 %v525_v0, %v525_v0  ;;  %v507_v7 = vadd.f32 %v506_v54, %v363_v2  ;;  %v1035_v54 = vld [vmem:[#allocation2 + $0x28] sm:$0xf0] }
  0xb8   : > { %v576_v11 = vunpack.c.l.b16 %v554_v6  ;;  %v551_v12 = vpack.c.bf16 %v507_v7, %v507_v7 }
  0xba   : > { %v566_v15 = vunpack.c.l.b16 %v551_v12 }
  0xbb   : > { %v526_v55 = vpop.f32.mrf.mxu1 }
  0xbc   : > { %v527_v61 = vadd.f32 %v526_v55, %v364_v58  ;;  %v562_v55 = vld [vmem:[%s1412_s5 + $0x10] sm:$0xf] }
  0xbd   : > { %v508_v56 = vpop.f32.mrf.mxu0 }
  0xbe   : > { %v555_v3 = vpack.c.bf16 %v527_v61, %v527_v61  ;;  %v509_v8 = vadd.f32 %v508_v56, %v363_v2  ;;  %v921_v56 = vor.u32 %v1035_v54, %v920_v53 }
  0xc0   : > { %v577_v9 = vunpack.c.l.b16 %v555_v3  ;;  %v552_v13 = vpack.c.bf16 %v509_v8, %v509_v8  ;;  %539 = vmatpush.bf16.msra.mxu2 %v921_v56 }
  0xc2   : > { %v579_v14 = vpack.c.b16 %v577_v9, %v576_v11  ;;  %v567_v16 = vunpack.c.l.b16 %v552_v13 }
  0xc3   : > { %v529_v59 = vpop.f32.mrf.mxu1 }
  0xc4   : > { %v530_v60 = vadd.f32 %v529_v59, %v364_v58  ;;  %v569_v17 = vpack.c.b16 %v567_v16, %v566_v15  ;;  %v908_v59 = vld [vmem:[#allocation2 + $0x8] sm:$0xf]  ;;  %v365_v16 = vperm.slane %v1339_v57, 2 }
  0xc5   : > { %v511_v63 = vpop.f32.mrf.mxu0 }
  0xc6   : > { %v556_v62 = vpack.c.bf16 %v530_v60, %v530_v60  ;;  %v512_v18 = vadd.f32 %v511_v63, %v363_v2  ;;  %v1032_v60 = vld [vmem:[#allocation2 + $0x10] sm:$0xf0] }
  0xc7   : > { %v909_v63 = vor.u32 %v1032_v60, %v908_v59  ;;  %v1055_v59 = vld [vmem:[%s1410_s3 + $0x8] sm:$0xff]  ;;  %v1054_v60 = vld [vmem:[%s1410_s3] sm:$0xff] }
  0xc8   : > { %v578_v1 = vunpack.c.l.b16 %v556_v62  ;;  %v553_v19 = vpack.c.bf16 %v512_v18, %v512_v18 }
  0xc9   : > { %540 = vmatpush.bf16.msra.mxu2 %v909_v63 }
  0xca   : > { %v580_v4 = vpack.c.b16 %v578_v1, %v578_v1  ;;  %v568_v20 = vunpack.c.l.b16 %v553_v19 }
  0xcb   : > { %v531_v5 = vpop.f32.mrf.mxu1 }
  0xcc   : > { %589 = vmatpush.bf16.xpose.msra.mxu3 %v580_v4  ;;  %v570_v21 = vpack.c.b16 %v568_v20, %v568_v20  ;;  %541 = vmatmul.bf16.vlgmr.msra.gmra.mxu2 %v1327_v49 }
  0xcd   : > { %v513_v10 = vpop.f32.mrf.mxu0 }
  0xd4   : > { %590 = vmatpush.bf16.xpose.msra.mxu3 %v579_v14 }
  0xdb   : > { %591 = vmatmul.bf16.vlgmr.msra.gmra.mxu3 %v569_v17 }
  0xdc   : > { %546 = vmatmul.bf16.gmra.mxu2 %v1335_v52 }
  0xeb   : > { %596 = vmatmul.bf16.gmra.mxu3 %v570_v21 }
 0x14f   : > { %v542_v14 = vpop.f32.mrf.mxu2 }
 0x150   : > { %v543_v17 = vadd.f32 %v542_v14, %v365_v16 }
 0x152   : > { %v557_v21 = vpack.c.bf16 %v543_v17, %v543_v17 }
 0x154   : > { %v650_v25 = vunpack.c.l.b16 %v557_v21 }
 0x157   : > { %v544_v15 = vpop.f32.mrf.mxu2 }
 0x158   : > { %v545_v18 = vadd.f32 %v544_v15, %v365_v16 }
 0x15a   : > { %v558_v22 = vpack.c.bf16 %v545_v18, %v545_v18 }
 0x15c   : > { %v651_v26 = vunpack.c.l.b16 %v558_v22 }
 0x15e   : > { %v592_v32 = vpop.f32.mrf.mxu3 }
 0x15f   : > { %v593_v35 = vadd.f32 %v592_v32, %v560_v30  ;;  %v547_v19 = vpop.f32.mrf.mxu2  ;;  %v653_v30 = vpack.c.b16 %v651_v26, %v650_v25  ;;  %v1061_v32 = vld [vmem:[%s1410_s3 + $0x38] sm:$0xff] }
 0x160   : > { %v548_v20 = vadd.f32 %v547_v19, %v365_v16  ;;  %754 = vmatpush.bf16.msrb.mxu0 %v1061_v32  ;;  %1062 = vmatpush.bf16.msrb.mxu1 %v1061_v32 }
 0x161   : > { %v602_v36 = vsel %vm601_vm0, %v593_v35, -inf }
 0x162   : > { %603 = vmax.xlane.f32.xlu0 %v602_v36  ;;  %v559_v23 = vpack.c.bf16 %v548_v20, %v548_v20  ;;  %v1059_v36 = vld [vmem:[%s1410_s3 + $0x28] sm:$0xff] }
 0x164   : > { %v652_v24 = vunpack.c.l.b16 %v559_v23  ;;  %755 = vmatpush.bf16.msrb.mxu0 %v1060_v34  ;;  %1063 = vmatpush.bf16.msrb.mxu1 %v1060_v34 }
 0x166   : > { %v594_v42 = vpop.f32.mrf.mxu3  ;;  %v654_v27 = vpack.c.b16 %v652_v24, %v652_v24 }
 0x167   : > { %v595_v47 = vadd.f32 %v594_v42, %v561_v40  ;;  %v549_v28 = vpop.f32.mrf.mxu2  ;;  %v1058_v42 = vld [vmem:[%s1410_s3 + $0x20] sm:$0xff] }
 0x168   : > { %v664_v29 = vsel %vm662_vm2, %v654_v27, 0  ;;  %756 = vmatpush.bf16.msrb.mxu0 %v1059_v36  ;;  %1064 = vmatpush.bf16.msrb.mxu1 %v1059_v36 }
 0x169   : > { %v605_v48 = vsel %vm601_vm0, %v595_v47, -inf  ;;  %672 = vmatpush.bf16.msrb.mxu3 %v664_v29 }
 0x16a   : > { %606 = vmax.xlane.f32.xlu0 %v605_v48  ;;  %v1057_v48 = vld [vmem:[%s1410_s3 + $0x18] sm:$0xff] }
 0x16c   : > { %757 = vmatpush.bf16.msrb.mxu0 %v1058_v42  ;;  %1065 = vmatpush.bf16.msrb.mxu1 %v1058_v42 }
 0x16d   : > { %673 = vmatpush.bf16.msrb.mxu3 %v653_v30 }
 0x16e   : > { %v597_v58 = vpop.f32.mrf.mxu3 }
 0x16f   : > { %v598_v61 = vadd.f32 %v597_v58, %v562_v55  ;;  %v1056_v58 = vld [vmem:[%s1410_s3 + $0x10] sm:$0xff] }
 0x170   : > { %758 = vmatpush.bf16.msrb.mxu0 %v1057_v48  ;;  %1066 = vmatpush.bf16.msrb.mxu1 %v1057_v48 }
 0x171   : > { %v609_v62 = vsel %vm608_vm1, %v598_v61, -inf }
 0x172   : > { %610 = vmax.xlane.f32.xlu1 %v609_v62 }
 0x174   : > { %759 = vmatpush.bf16.msrb.mxu0 %v1056_v58  ;;  %1067 = vmatpush.bf16.msrb.mxu1 %v1056_v58 }
 0x176   : > { %v599_v0 = vpop.f32.mrf.mxu3 }
 0x178   : > { %760 = vmatpush.bf16.msrb.mxu0 %v1055_v59  ;;  %1068 = vmatpush.bf16.msrb.mxu1 %v1055_v59 }
 0x17c   : > { %761 = vmatpush.bf16.msrb.mxu0 %v1054_v60  ;;  %1069 = vmatpush.bf16.msrb.mxu1 %v1054_v60 }
 0x1d5   : > { %v604_v1 = vpop.xlane.xlu0 %603 }
 0x1d6   : > { %v612_v2 = vsub.f32 %v593_v35, %v604_v1 }
 0x1d8   : > { %v615_v3 = vmul.f32 1.442695, %v612_v2 }
 0x1da   : > { %1119 = vpow2.f32 %v615_v3  ;;  %v1118_v3 = vld [vmem:[%s1411_s4] ss:$0 sm:$0xff] }
 0x1dd   : > { %v607_v4 = vpop.xlane.xlu0 %606 }
 0x1de   : > { %v613_v5 = vsub.f32 %v595_v47, %v607_v4 }
 0x1e0   : > { %v1120_v6 = vpop.eup %1119  ;;  %v617_v7 = vmul.f32 1.442695, %v613_v5 }
 0x1e1   : > { %v621_v8 = vsel %vm601_vm0, %v1120_v6, 0.0 }
 0x1e2   : > { %1121 = vpow2.f32 %v617_v7  ;;  %622 = vadd.xlane.f32.xlu1 %v621_v8 }
 0x1e5   : > { %v611_v9 = vpop.xlane.xlu1 %610 }
 0x1e6   : > { %v614_v10 = vsub.f32 %v598_v61, %v611_v9 }
 0x1e8   : > { %v1122_v11 = vpop.eup %1121  ;;  %v619_v12 = vmul.f32 1.442695, %v614_v10 }
 0x1e9   : > { %v624_v49 = vsel %vm601_vm0, %v1122_v11, 0.0 }
 0x1ea   : > { %1123 = vpow2.f32 %v619_v12  ;;  %625 = vadd.xlane.f32.xlu2 %v624_v49 }
 0x1f0   : > { %v1124_v52 = vpop.eup %1123 }
 0x1f1   : > { %v627_v13 = vsel %vm608_vm1, %v1124_v52, 0.0 }
 0x1f2   : > { %628 = vadd.xlane.f32.xlu2 %v627_v13 }
 0x255   : > { %v623_v31 = vpop.xlane.xlu1 %622 }
 0x256   : > { %1125 = vrcp.f32 %v623_v31 }
 0x25c   : > { %v1126_v33 = vpop.eup %1125 }
 0x25d   : > { %v626_v57 = vpop.xlane.xlu2 %625  ;;  %v633_v35 = vmul.f32 %v1126_v33, %v1120_v6 }
 0x25e   : > { %1127 = vrcp.f32 %v626_v57 }
 0x25f   : > { %v636_v38 = vpack.c.bf16 %v633_v35, %v633_v35 }
 0x261   : > { %v642_v44 = vunpack.c.l.b16 %v636_v38 }
 0x264   : > { %v1128_v37 = vpop.eup %1127 }
 0x265   : > { %v634_v39 = vmul.f32 %v1128_v37, %v1122_v11  ;;  %v629_v40 = vpop.xlane.xlu2 %628 }
 0x266   : > { %1129 = vrcp.f32 %v629_v40 }
 0x267   : > { %v637_v41 = vpack.c.bf16 %v634_v39, %v634_v39 }
 0x269   : > { %v643_v45 = vunpack.c.l.b16 %v637_v41 }
 0x26b   : > { %v645_v47 = vpack.c.b16 %v643_v45, %v642_v44 }
 0x26c   : > { %v1130_v50 = vpop.eup %1129 }
 0x26d   : > { %994 = vmatmul.msk.bf16.vlgmr.msrb.gmra.mxu3 %vm601_vm0, %v645_v47  ;;  %v635_v53 = vmul.f32 %v1130_v50, %v1124_v52 }
 0x26f   : > { %v638_v54 = vpack.c.bf16 %v635_v53, %v635_v53 }
 0x271   : > { %v644_v55 = vunpack.c.l.b16 %v638_v54 }
 0x273   : > { %v646_v56 = vpack.c.b16 %v644_v55, %v644_v55 }
 0x27d   : > { %995 = vmatmul.msk.bf16.gmra.mxu3 %vm601_vm0, %v646_v56 }
 0x2f0   : > { %v675_v61 = vpop.f32.mrf.mxu3 }
 0x2f8   : > { %v677_v62 = vpop.f32.mrf.mxu3 }
 0x2f9   : > { %v684_v63 = vpack.c.bf16 %v677_v62, %v675_v61 }
 0x2fb   : > { %762 = vmatmul.bf16.vlgmr.msrb.gmra.mxu0 %v684_v63 }
 0x300   : > { %v680_v0 = vpop.f32.mrf.mxu3 }
 0x301   : > { %v685_v1 = vpack.c.bf16 %v680_v0, %v680_v0 }
 0x303   : > { %767 = vmatmul.bf16.vlgmr.msrb.gmra.mxu1 %v685_v1 }
 0x308   : > { %v682_v2 = vpop.f32.mrf.mxu3 }
 0x378   : > { %v763_v4 = vpop.f32.mrf.mxu0 }
 0x379   : > { %v764_v5 = vadd.f32 %v1118_v3, %v763_v4 }
 0x37b   : > { %v772_v6 = vadd.f32 %v764_v5, %v1321_v43 }
 0x37d   : > { %775 = vst [vmem:[%s321_s7] sm:$0xff] %v772_v6 }
 0x380   : > { %v765_v7 = vpop.f32.mrf.mxu0  ;;  %v768_v8 = vpop.f32.mrf.mxu1 }
 0x381   : > { %v766_v9 = vadd.f32 %v1118_v3, %v765_v7  ;;  %v769_v10 = vadd.f32 %v1118_v3, %v768_v8 }
 0x383   : > { %v773_v11 = vadd.f32 %v766_v9, %v1323_v46  ;;  %v774_v12 = vadd.f32 %v769_v10, %v1331_v51 }
 0x385   : > { %776 = vst [vmem:[%s321_s7 + $0x8] sm:$0xff] %v773_v11 }
 0x386   : > { %777 = vst [vmem:[%s321_s7 + $0x10] sm:$0xf] %v774_v12 }
 0x388   : > { %v770_v49 = vpop.f32.mrf.mxu1 }
 0x389 PF: > { %s18_s23 = sadd.s32 1, %s1221_s23   ;;  %s1416_s21 = smov %s1217_s22 }
 0x38a   : > { %p15_p8 = scmp.ge.s32.totalorder %s18_s23, 4   ;;  %s1417_s22 = smov %s1419_s25 }
 0x38c   :  { %17 = sbr.rel (!%p15_p8) target bundleno = 3 (0x3), region = 83 }
 0x391   :  { %808 = vsyncpa [#allocation3], 1 }
 0x392   :  { %810 = vsyncpa [#allocation3 + $0x1], 1 }
 0x393   :  { %811 = vsyncpa [#allocation5], 1 }

</bundles_post_ra>
